<compile_context>
chip_gen: v7x
topology: tpu7x:2x2x1
jax: 0.10.0
libtpu: 0.0.40
codegen_flags: <defaults>
</compile_context>

<pallas_src>
import numpy as np
import jax
import jax.numpy as jnp
from jax.experimental import pallas as pl
from jax.experimental.pallas import tpu as pltpu

N_EMBD = 32
DROPOUT_P = 0.2
KEEP_PROB = 1.0 - DROPOUT_P
# keep iff uniform uint32 < KEEP_PROB * 2^32  (exact Bernoulli(KEEP_PROB) on 32 bits)
KEEP_THRESHOLD_U32 = np.uint32(int(KEEP_PROB * (2.0 ** 32)))


def feedforward_kernel(x_ref, w_ref, b_ref, bits_ref, o_ref):
    # ---- Linear (MXU) ----
    y = jnp.dot(x_ref[...], w_ref[...], preferred_element_type=jnp.float32)
    y = y + b_ref[...]                       # bias broadcast over rows
    # ---- ReLU (VPU) ----
    y = jnp.maximum(y, 0.0)
    # ---- Dropout (inverted dropout, p = 0.2): integer-threshold compare ----
    keep = bits_ref[...] < jnp.uint32(KEEP_THRESHOLD_U32)
    y = jnp.where(keep, y * (1.0 / KEEP_PROB), 0.0)
    o_ref[...] = y.astype(o_ref.dtype)


def feed_forward(x, w, b, dropout_key):
    """x: (B, T, C) float32; w: (C, C) laid out (in, out); b: (C,).

    dropout_key: jax PRNG key. The caller must supply a fresh key each training step.
    Mask pattern differs from torch's RNG but has identical keep probability (0.8).
    """
    B, T, C = x.shape
    M = B * T
    x2 = x.reshape(M, C)
    b2 = b.reshape(1, C)
    # Per-element uint32 dropout bits; each row tile consumes its own slice.
    bits = jax.random.bits(dropout_key, (M, C), dtype=jnp.uint32)

    # Row tile: full M when small, else 512 rows (multiple of 8 sublanes).
    tm = M if M <= 512 else 512
    grid = (pl.cdiv(M, tm),)

    out2 = pl.pallas_call(
        feedforward_kernel,
        out_shape=jax.ShapeDtypeStruct((M, C), x.dtype),
        grid=grid,
        in_specs=[
            pl.BlockSpec((tm, C), lambda i: (i, 0)),   # x tile
            pl.BlockSpec((C, C), lambda i: (0, 0)),    # W resident
            pl.BlockSpec((1, C), lambda i: (0, 0)),    # b resident
            pl.BlockSpec((tm, C), lambda i: (i, 0)),   # dropout bits tile
        ],
        out_specs=pl.BlockSpec((tm, C), lambda i: (i, 0)),
        compiler_params=pltpu.CompilerParams(
            dimension_semantics=("parallel",)),
    )(x2, w, b2, bits)
    return out2.reshape(B, T, C)


def init_params(key, n_embd):
    # Match torch.nn.Linear default init: U(-1/sqrt(fan_in), 1/sqrt(fan_in))
    kw, kb = jax.random.split(key)
    bound = 1.0 / np.sqrt(n_embd)
    # stored transposed relative to torch (.weight is (out, in)); here (in, out)
    w = jax.random.uniform(kw, (n_embd, n_embd), jnp.float32, -bound, bound)
    b = jax.random.uniform(kb, (n_embd,), jnp.float32, -bound, bound)
    return w, b


if __name__ == "__main__":
    key = jax.random.PRNGKey(0)
    kx, kp, kd = jax.random.split(key, 3)

    B, T, C = 2, 8, N_EMBD
    x = jax.random.normal(kx, (B, T, C), jnp.float32)
    w, b = init_params(kp, C)

    out = feed_forward(x, w, b, dropout_key=kd)
    out = jax.block_until_ready(out)

    # Exact reference: recreate the same dropout bits the wrapper generated.
    M = B * T
    bits = np.asarray(jax.random.bits(kd, (M, C), dtype=jnp.uint32))
    keep = bits < KEEP_THRESHOLD_U32
    ref_lin = np.maximum(np.asarray(x).reshape(M, C) @ np.asarray(w) + np.asarray(b), 0.0)
    ref = np.where(keep, ref_lin / KEEP_PROB, 0.0)

    out_np = np.asarray(out).reshape(M, C)
    assert out_np.shape == (M, C)
    assert np.allclose(out_np, ref, rtol=1e-5, atol=1e-5)

    print("KERNEL_OK")
</pallas_src>

<mosaic_0001>
module attributes {stable_mosaic.version = 11 : i64} {
  func.func @feedforward_kernel(%arg0: i32, %arg1: memref<16x32xf32, #tpu.memory_space<vmem>>, %arg2: memref<32x32xf32, #tpu.memory_space<vmem>>, %arg3: memref<1x32xf32, #tpu.memory_space<vmem>>, %arg4: memref<16x32xi32, #tpu.memory_space<vmem>>, %arg5: memref<16x32xf32, #tpu.memory_space<vmem>>) attributes {dimension_semantics = [#tpu.dimension_semantics<parallel>], iteration_bounds = array<i64: 1>, scalar_prefetch = 0 : i64, scratch_operands = 0 : i64, tpu.core_type = #tpu.core_type<tc>, window_params = [{transform_indices = @transform_0, window_bounds = array<i64: 16, 32>}, {pipeline_mode = #tpu.pipeline_mode<synchronous>, transform_indices = @transform_1, window_bounds = array<i64: 32, 32>}, {pipeline_mode = #tpu.pipeline_mode<synchronous>, transform_indices = @transform_2, window_bounds = array<i64: 1, 32>}, {transform_indices = @transform_3, window_bounds = array<i64: 16, 32>}, {transform_indices = @transform_4, window_bounds = array<i64: 16, 32>}]} {
    %c0 = arith.constant 0 : index
    %c0_0 = arith.constant 0 : index
    %0 = vector.load %arg1[%c0, %c0_0] : memref<16x32xf32, #tpu.memory_space<vmem>>, vector<16x32xf32>
    %c0_1 = arith.constant 0 : index
    %c0_2 = arith.constant 0 : index
    %1 = vector.load %arg2[%c0_1, %c0_2] : memref<32x32xf32, #tpu.memory_space<vmem>>, vector<32x32xf32>
    %cst = arith.constant dense<0.000000e+00> : vector<16x32xf32>
    %2 = tpu.matmul %0, %1, %cst {dimension_numbers = #tpu.dot_dimension_numbers<[1], [0], [0], [1], [0, 0, 1, 1], [], []>} : vector<16x32xf32>, vector<32x32xf32>, vector<16x32xf32> -> vector<16x32xf32>
    %c0_3 = arith.constant 0 : index
    %c0_4 = arith.constant 0 : index
    %3 = vector.load %arg3[%c0_3, %c0_4] : memref<1x32xf32, #tpu.memory_space<vmem>>, vector<1x32xf32>
    %4 = vector.broadcast %3 : vector<1x32xf32> to vector<16x32xf32>
    %5 = arith.addf %2, %4 : vector<16x32xf32>
    %cst_5 = arith.constant 0.000000e+00 : f32
    %6 = vector.broadcast %cst_5 : f32 to vector<16x32xf32>
    %7 = arith.maximumf %5, %6 : vector<16x32xf32>
    %c0_6 = arith.constant 0 : index
    %c0_7 = arith.constant 0 : index
    %8 = vector.load %arg4[%c0_6, %c0_7] : memref<16x32xi32, #tpu.memory_space<vmem>>, vector<16x32xi32>
    %c-858993460_i32 = arith.constant -858993460 : i32
    %9 = vector.broadcast %c-858993460_i32 : i32 to vector<16x32xi32>
    %10 = arith.cmpi ult, %8, %9 : vector<16x32xi32>
    %cst_8 = arith.constant 1.250000e+00 : f32
    %11 = vector.broadcast %cst_8 : f32 to vector<16x32xf32>
    %12 = arith.mulf %7, %11 : vector<16x32xf32>
    %cst_9 = arith.constant 0.000000e+00 : f32
    %13 = vector.broadcast %cst_9 : f32 to vector<16x32xf32>
    %14 = arith.select %10, %12, %13 : vector<16x32xi1>, vector<16x32xf32>
    %c0_10 = arith.constant 0 : index
    %c0_11 = arith.constant 0 : index
    %15 = vector.load %arg5[%c0_10, %c0_11] : memref<16x32xf32, #tpu.memory_space<vmem>>, vector<16x32xf32>
    tpu.vector_store %arg5[%c0_10, %c0_11], %14 {strides = array<i32>} : memref<16x32xf32, #tpu.memory_space<vmem>>, vector<16x32xf32>,
    return
  }
  func.func @transform_0(%arg0: i32) -> (i32, i32) {
    %c0_i32 = arith.constant 0 : i32
    %c0_i32_0 = arith.constant 0 : i32
    return %arg0, %c0_i32 : i32, i32
  }
  func.func @transform_1(%arg0: i32) -> (i32, i32) {
    %c0_i32 = arith.constant 0 : i32
    %c0_i32_0 = arith.constant 0 : i32
    %c0_i32_1 = arith.constant 0 : i32
    return %c0_i32, %c0_i32_0 : i32, i32
  }
  func.func @transform_2(%arg0: i32) -> (i32, i32) {
    %c0_i32 = arith.constant 0 : i32
    %c0_i32_0 = arith.constant 0 : i32
    %c0_i32_1 = arith.constant 0 : i32
    return %c0_i32, %c0_i32_0 : i32, i32
  }
  func.func @transform_3(%arg0: i32) -> (i32, i32) {
    %c0_i32 = arith.constant 0 : i32
    %c0_i32_0 = arith.constant 0 : i32
    return %arg0, %c0_i32 : i32, i32
  }
  func.func @transform_4(%arg0: i32) -> (i32, i32) {
    %c0_i32 = arith.constant 0 : i32
    %c0_i32_0 = arith.constant 0 : i32
    return %arg0, %c0_i32 : i32, i32
  }
}

</mosaic_0001>

<bundles_post_ra>
// kernel: tpu_custom_call.1
= control target key start
LH: loop header
LB: loop body
LE: loop exit
PB: predicated region body
PF: predicated region fallthrough
CT: control target
= control target key end

     0   :  { %9 = vsyncpa [#allocation3], 0  ;;  %s417_s0 = inlined_call_operand.hbm [shape: f32[16,32], index: 0, kind: input, shape index: {}]   ;;  %s418_s1 = inlined_call_operand.hbm [shape: f32[32,32], index: 1, kind: input, shape index: {}]   ;;  %s419_s2 = inlined_call_operand.vmem [shape: f32[1,32], index: 2, kind: input, shape index: {}]   ;;  %s420_s3 = inlined_call_operand.hbm [shape: u32[16,32], index: 3, kind: input, shape index: {}]   ;;  %s421_s4 = inlined_call_operand.hbm [shape: f32[16,32], index: 4, kind: output, shape index: {}]  }
   0x1   :  { %10 = vsyncpa [#allocation6], 0 }
   0x2   :  { %11 = vsyncpa [#allocation4], 0  ;;  %s312_s15 = smov [#allocation5]   ;;  %s313_s17 = smov [#allocation2]  }
   0x3   :  { %s29_s16 = sshll.u32 %s312_s15, 4  ;;  %s17_s18 = sshll.u32 %s313_s17, 4  ;;  %s30_s16 = int_to_ptr.vmem [resolvable:$true] %s29_s16  ;;  %s343_s18 = int_to_ptr.vmem [resolvable:$true] %s17_s18 }
   0x4   :  { %s218_s21 = scalar_lea.hbm %s418_s1, 512 }
   0x5   :  { %p219_p0 = scmp.ne.s32.totalorder %s418_s1, %s218_s21  ;;  %p222_p1 = scmp.lt.u32.totalorder %s218_s21, %s418_s1 }
   0x7   :  { %p224_p2 = pnand %p222_p1, %p219_p0 }
   0x9   :  { %227 = shalt.err (!%p224_p2)
}
   0xa   :  { %s228_s26 = scalar_lea.vmem %s30_s16, 512  ;;  %p233_p4 = scmp.lt.s32.totalorder %s30_s16, %s30_s16 }
   0xb   :  { %p229_p3 = scmp.ne.s32.totalorder %s30_s16, %s228_s26  ;;  %p234_p5 = scmp.lt.s32.totalorder %s228_s26, %s228_s26 }
   0xd   :  { %p235_p6 = por %p234_p5, %p233_p4 }
   0xf   :  { %p236_p7 = pnand %p235_p6, %p229_p3 }
  0x11   :  { %239 = shalt.err (!%p236_p7)
}
  0x12   :  { %s314_s27 = smov 128   ;;  %s315_s28 = smov 8  }
  0x13   :  { %35 = dma.hbm_to_vmem [thread:$0]  %s418_s1, 512, %s30_s16, [#allocation6], %s314_s27, %s314_s27, %s315_s28  }
  0x14   :  { %s240_s7 = scalar_lea.hbm %s417_s0, 256 }
  0x15   :  { %p241_p8 = scmp.ne.s32.totalorder %s417_s0, %s240_s7  ;;  %p244_p9 = scmp.lt.u32.totalorder %s240_s7, %s417_s0 }
  0x17   :  { %p246_p10 = pnand %p244_p9, %p241_p8 }
  0x19   :  { %249 = shalt.err (!%p246_p10)
}
  0x1a   :  { %s250_s12 = scalar_lea.vmem %s343_s18, 256  ;;  %p255_p12 = scmp.lt.s32.totalorder %s343_s18, %s343_s18 }
  0x1b   :  { %p251_p11 = scmp.ne.s32.totalorder %s343_s18, %s250_s12  ;;  %p256_p13 = scmp.lt.s32.totalorder %s250_s12, %s250_s12 }
  0x1d   :  { %p257_p0 = por %p256_p13, %p255_p12 }
  0x1f   :  { %p258_p1 = pnand %p257_p0, %p251_p11 }
  0x21   :  { %261 = shalt.err (!%p258_p1)
}
  0x22   :  { %23 = dma.hbm_to_vmem [thread:$0]  %s417_s0, 256, %s343_s18, [#allocation3], %s314_s27, %s314_s27, %s315_s28  }
  0x23   :  { %s316_s14 = smov [#allocation7]   ;;  %s262_s19 = scalar_lea.hbm %s420_s3, 256 }
  0x24   :  { %s43_s15 = sshll.u32 %s316_s14, 4  ;;  %p263_p2 = scmp.ne.s32.totalorder %s420_s3, %s262_s19  ;;  %s44_s15 = int_to_ptr.vmem [resolvable:$true] %s43_s15 }
  0x25   :  { %p266_p3 = scmp.lt.u32.totalorder %s262_s19, %s420_s3 }
  0x27   :  { %p268_p4 = pnand %p266_p3, %p263_p2 }
  0x29   :  { %271 = shalt.err (!%p268_p4)
}
  0x2a   :  { %s272_s24 = scalar_lea.vmem %s44_s15, 256  ;;  %p277_p6 = scmp.lt.s32.totalorder %s44_s15, %s44_s15 }
  0x2b   :  { %p273_p5 = scmp.ne.s32.totalorder %s44_s15, %s272_s24  ;;  %p278_p7 = scmp.lt.s32.totalorder %s272_s24, %s272_s24 }
  0x2d   :  { %p279_p8 = por %p278_p7, %p277_p6 }
  0x2f   :  { %p280_p9 = pnand %p279_p8, %p273_p5 }
  0x31   :  { %283 = shalt.err (!%p280_p9)
}
  0x32   :  { %49 = dma.hbm_to_vmem [thread:$0]  %s420_s3, 256, %s44_s15, [#allocation6], %s314_s27, %s314_s27, %s315_s28  }
  0x33   :  { %306 = dma.done.wait [#allocation3], 256  }
  0x34   :  { %307 = vsyncadd [#allocation3], 4294967040 }
  0x35   :  { %308 = dma.done.wait [#allocation6], 768  }
  0x36   :  { %309 = vsyncadd [#allocation6], 4294966528  ;;  %vm72_vm0 = vcmask 261120   ;;  %v61_v0 = vld [vmem:[#allocation5] sm:$0xff]  ;;  %v62_v1 = vld [vmem:[#allocation5 + $0x8] sm:$0xff]  ;;  %s317_s26 = smov [#allocation8]  }
  0x37   :  { %v63_v2 = vld [vmem:[#allocation5 + $0x10] sm:$0xff]  ;;  %v204_v3 = vpack.c.bf16 %v62_v1, %v61_v0  ;;  %v64_v4 = vld [vmem:[#allocation5 + $0x18] sm:$0xff]  ;;  %v157_v11 = vld [vmem:[#allocation7 + $0x8] sm:$0xff]  ;;  %s171_s29 = sshll.u32 %s317_s26, 4  ;;  %s172_s29 = int_to_ptr.vmem [resolvable:$true] %s171_s29 }
  0x38   :  { %v59_v5 = vld [vmem:[#allocation2] sm:$0xff]  ;;  %v208_v6 = vpack.c.bf16 %v64_v4, %v63_v2  ;;  %v60_v7 = vld [vmem:[#allocation2 + $0x8] sm:$0xff]  ;;  %v156_v14 = vld [vmem:[#allocation7] sm:$0xff]  ;;  %vm159_vm1 = vcmp.lt.u32.totalorder %v157_v11, 3435973836  ;;  %p289_p11 = scmp.lt.s32.totalorder %s172_s29, %s172_s29 }
  0x39   :  { %201 = vmatprep.mubr.msk.f32.mxu0 %vm72_vm0, %v59_v5  ;;  %205 = vmatprep.subr.bf16.mxu0 %v204_v3  ;;  %v184_v8 = vld [vmem:[%s419_s2] ss:$0 sm:$0xff]  ;;  %vm158_vm2 = vcmp.lt.u32.totalorder %v156_v14, 3435973836  ;;  %s284_s2 = scalar_lea.vmem %s172_s29, 256 }
  0x3a   :  { %207 = vmatpush3.bf16.msra.mxu0 %v204_v3  ;;  %p285_p10 = scmp.ne.s32.totalorder %s172_s29, %s284_s2  ;;  %p290_p12 = scmp.lt.s32.totalorder %s284_s2, %s284_s2 }
  0x3b   :  { %209 = vmatprep.subr.bf16.mxu0 %v208_v6 }
  0x3c   :  { %p291_p13 = por %p290_p12, %p289_p11 }
  0x3e   :  { %211 = vmatpush3.bf16.msra.mxu0 %v208_v6  ;;  %p292_p0 = pnand %p291_p13, %p285_p10 }
  0x41   :  { %202 = vmatmul.mubr.msk.f32.vlgmr.msra.gmra.mrb[0].mxu0 %vm72_vm0, %v60_v7 }
 0x114   :  { %v203_v9 = vpop.f32.mrb[0].mxu0 }
 0x115   :  { %v151_v10 = vadd.f32 %v203_v9, %v184_v8  ;;  %v145_v12 = vpop.f32.mrb[1].mxu0 }
 0x116   :  { %v146_v13 = vadd.f32 %v184_v8, %v145_v12 }
 0x117   :  { %v155_v15 = vmax.f32 %v151_v10, 0.0 }
 0x118   :  { %v154_v16 = vmax.f32 %v146_v13, 0.0 }
 0x119   :  { %v161_v17 = vmul.f32 1.25, %v155_v15 }
 0x11a   :  { %v160_v18 = vmul.f32 1.25, %v154_v16 }
 0x11b   :  { %v163_v19 = vsel %vm159_vm1, %v161_v17, 0.0 }
 0x11c   :  { %165 = vst.msk [vmem:[#allocation8 + $0x8] sm:$0xff] %vm72_vm0, %v163_v19  ;;  %v162_v20 = vsel %vm158_vm2, %v160_v18, 0.0 }
 0x11d   :  { %164 = vst.msk [vmem:[#allocation8] sm:$0xff] %vm72_vm0, %v162_v20 }
 0x11e   :  { %295 = shalt.err (!%p292_p0)
}
 0x11f   :  { %s296_s6 = scalar_lea.hbm %s421_s4, 256 }
 0x120   :  { %p297_p1 = scmp.ne.s32.totalorder %s421_s4, %s296_s6  ;;  %p300_p2 = scmp.lt.u32.totalorder %s296_s6, %s421_s4 }
 0x122   :  { %p302_p3 = pnand %p300_p2, %p297_p1 }
 0x124   :  { %305 = shalt.err (!%p302_p3)
}
 0x125   :  { %177 = dma.vmem_to_hbm [thread:$0]  %s172_s29, 256, %s421_s4, [#allocation4], %s314_s27, %s314_s27, %s315_s28  }
 0x126   :  { %310 = dma.done.wait [#allocation4], 256  }
 0x127   :  { %311 = vsyncadd [#allocation4], 4294967040 }
 0x128   :  { %181 = vsyncpa [#allocation3], 1 }
 0x129   :  { %182 = vsyncpa [#allocation6], 1 }
 0x12a   :  { %183 = vsyncpa [#allocation4], 1 }

</bundles_post_ra>
